<compile_context>
chip_gen: v6e
topology: v6e:2x2x1
jax: 0.10.0
libtpu: 0.0.40
codegen_flags: <defaults>
</compile_context>

<pallas_src>
import jax
import jax.numpy as jnp
from jax.experimental import pallas as pl
from jax.experimental.pallas import tpu as pltpu


def mlp_kernel(x_ref, w1_ref, b1_ref, w2_ref, b2_ref, o_ref):
    # Layer 1: x @ W1 + b1, ReLU   (MXU matmul, f32 accumulation)
    h = jnp.dot(x_ref[...], w1_ref[...], preferred_element_type=jnp.float32)
    h = jnp.maximum(h + b1_ref[...], 0.0)          # b1 is (1, 128), broadcasts over rows
    # Layer 2: h @ W2 + b2, ReLU   (the (TILE_B, 128) intermediate stays in VMEM/vregs)
    o = jnp.dot(h.astype(w2_ref.dtype), w2_ref[...], preferred_element_type=jnp.float32)
    o = jnp.maximum(o + b2_ref[...], 0.0)          # b2 is (1, N_store)
    o_ref[...] = o.astype(o_ref.dtype)


def prepare_params(w1, b1, w2, b2, *, max_pad_frac=0.125):
    """One-time parameter preparation (hoisted out of the per-call path).

    Only pads the output channels to a multiple of 128 when the relative padding
    overhead is small (e.g. 120 -> 128); otherwise the kernel stores the exact
    out_dims columns (masked stores are cheaper than 8x extra HBM writes + a slice).
    Padded columns are exactly zero -> ReLU(0 + 0) = 0 -> semantics unchanged.
    """
    hidden = w1.shape[1]
    out_dims = w2.shape[1]
    LANE = 128
    n_pad = ((out_dims + LANE - 1) // LANE) * LANE
    if n_pad != out_dims and (n_pad - out_dims) <= max_pad_frac * out_dims:
        w2_s = jnp.pad(w2, ((0, 0), (0, n_pad - out_dims)))
        b2_s = jnp.pad(b2, (0, n_pad - out_dims))
        n_store = n_pad
    else:
        w2_s, b2_s = w2, b2
        n_store = out_dims
    return (w1, b1.reshape(1, hidden), w2_s, b2_s.reshape(1, n_store), out_dims)


def mlp_forward(x, params, *, tile_b=4096):
    """Fused MLP forward.  x: (B, in_dims); params from prepare_params()."""
    w1, b1_2d, w2_s, b2_2d, out_dims = params
    B, in_dims = x.shape
    hidden = w1.shape[1]
    n_store = w2_s.shape[1]

    # --- Batch tiling ---------------------------------------------------------
    # TILE_B is either a multiple of 8 or the full batch, so the (8,128) block
    # constraint is always satisfied.  Big tiles amortize the ~0.35 us/step grid
    # overhead; cap so large batches give >=2 grid steps (keeps both v7x TCs busy).
    TILE_B = min(tile_b, B)
    if B >= 16:
        half_b = ((B + 1) // 2 + 7) // 8 * 8        # ceil(B/2) rounded up to 8
        TILE_B = min(TILE_B, half_b)
    grid = (pl.cdiv(B, TILE_B),)

    # Advisory cost estimate for XLA's scheduler.
    flops = 2 * B * (in_dims * hidden + hidden * n_store)
    bytes_accessed = 4 * (B * in_dims + in_dims * hidden + hidden
                          + hidden * n_store + n_store + B * n_store)
    cost = pl.CostEstimate(flops=flops, transcendentals=0,
                           bytes_accessed=bytes_accessed)

    out = pl.pallas_call(
        mlp_kernel,
        out_shape=jax.ShapeDtypeStruct((B, n_store), x.dtype),
        grid_spec=pl.GridSpec(
            grid=grid,
            in_specs=[
                pl.BlockSpec((TILE_B, in_dims), lambda i: (i, 0)),   # x: tiled over batch
                pl.BlockSpec((in_dims, hidden), lambda i: (0, 0)),   # W1: VMEM-resident
                pl.BlockSpec((1, hidden), lambda i: (0, 0)),         # b1: VMEM-resident
                pl.BlockSpec((hidden, n_store), lambda i: (0, 0)),   # W2: VMEM-resident
                pl.BlockSpec((1, n_store), lambda i: (0, 0)),        # b2: VMEM-resident
            ],
            out_specs=pl.BlockSpec((TILE_B, n_store), lambda i: (i, 0)),
        ),
        compiler_params=pltpu.CompilerParams(
            # Batch tiles are independent -> shard across v7x's 2 TensorCores.
            dimension_semantics=("parallel",),
            # 4096-row f32 tiles are only a few MiB; 32 MiB leaves headroom under
            # v7x's 64 MiB physical VMEM and is the scoped default on v6e.
            vmem_limit_bytes=32 * 1024 * 1024,
        ),
        cost_estimate=cost,
    )(x, w1, b1_2d, w2_s, b2_2d)

    if n_store != out_dims:
        out = out[:, :out_dims]
    return out


def init_params(key, in_dims, hidden, out_dims):
    # PyTorch nn.Linear default init: U(-1/sqrt(fan_in), 1/sqrt(fan_in))
    k1, k2, k3, k4 = jax.random.split(key, 4)
    bound1 = 1.0 / jnp.sqrt(in_dims)
    bound2 = 1.0 / jnp.sqrt(hidden)
    w1 = jax.random.uniform(k1, (in_dims, hidden), jnp.float32, -bound1, bound1)
    b1 = jax.random.uniform(k2, (hidden,), jnp.float32, -bound1, bound1)
    w2 = jax.random.uniform(k3, (hidden, out_dims), jnp.float32, -bound2, bound2)
    b2 = jax.random.uniform(k4, (out_dims,), jnp.float32, -bound2, bound2)
    return w1, b1, w2, b2


if __name__ == "__main__":
    B, in_dims, hidden, out_dims = 8, 32, 128, 16

    key = jax.random.PRNGKey(0)
    kx, kp = jax.random.split(key)
    x = jax.random.normal(kx, (B, in_dims), jnp.float32)
    w1, b1, w2, b2 = init_params(kp, in_dims, hidden, out_dims)

    params = prepare_params(w1, b1, w2, b2)   # one-time prep, reused across calls

    out = mlp_forward(x, params)
    out = jax.block_until_ready(out)

    # Pure-JAX reference check
    ref = jnp.maximum(jnp.maximum(x @ w1 + b1, 0.0) @ w2 + b2, 0.0)
    assert out.shape == (B, out_dims)
    assert jnp.allclose(out, ref, atol=1e-5, rtol=1e-5)

    # Multi-tile / >=2-grid-step path (also exercises the v7x TC split logic).
    B_big = 4096
    x_big = jax.random.normal(kx, (B_big, in_dims), jnp.float32)
    out_big = jax.block_until_ready(mlp_forward(x_big, params))
    ref_big = jnp.maximum(jnp.maximum(x_big @ w1 + b1, 0.0) @ w2 + b2, 0.0)
    assert out_big.shape == (B_big, out_dims)
    assert jnp.allclose(out_big, ref_big, atol=1e-5, rtol=1e-5)

    # Ragged last-tile path.
    B_odd = 1000
    x_odd = jax.random.normal(kx, (B_odd, in_dims), jnp.float32)
    out_odd = jax.block_until_ready(mlp_forward(x_odd, params))
    ref_odd = jnp.maximum(jnp.maximum(x_odd @ w1 + b1, 0.0) @ w2 + b2, 0.0)
    assert out_odd.shape == (B_odd, out_dims)
    assert jnp.allclose(out_odd, ref_odd, atol=1e-5, rtol=1e-5)

    print("KERNEL_OK")
</pallas_src>

<mosaic_0001>
module attributes {stable_mosaic.version = 11 : i64} {
  func.func @mlp_kernel(%arg0: i32, %arg1: memref<8x32xf32, #tpu.memory_space<vmem>>, %arg2: memref<32x128xf32, #tpu.memory_space<vmem>>, %arg3: memref<1x128xf32, #tpu.memory_space<vmem>>, %arg4: memref<128x16xf32, #tpu.memory_space<vmem>>, %arg5: memref<1x16xf32, #tpu.memory_space<vmem>>, %arg6: memref<8x16xf32, #tpu.memory_space<vmem>>) attributes {dimension_semantics = [#tpu.dimension_semantics<parallel>], iteration_bounds = array<i64: 1>, scalar_prefetch = 0 : i64, scratch_operands = 0 : i64, tpu.core_type = #tpu.core_type<tc>, window_params = [{transform_indices = @transform_0, window_bounds = array<i64: 8, 32>}, {pipeline_mode = #tpu.pipeline_mode<synchronous>, transform_indices = @transform_1, window_bounds = array<i64: 32, 128>}, {pipeline_mode = #tpu.pipeline_mode<synchronous>, transform_indices = @transform_2, window_bounds = array<i64: 1, 128>}, {pipeline_mode = #tpu.pipeline_mode<synchronous>, transform_indices = @transform_3, window_bounds = array<i64: 128, 16>}, {pipeline_mode = #tpu.pipeline_mode<synchronous>, transform_indices = @transform_4, window_bounds = array<i64: 1, 16>}, {transform_indices = @transform_5, window_bounds = array<i64: 8, 16>}]} {
    %c0 = arith.constant 0 : index
    %c0_0 = arith.constant 0 : index
    %0 = vector.load %arg1[%c0, %c0_0] : memref<8x32xf32, #tpu.memory_space<vmem>>, vector<8x32xf32>
    %c0_1 = arith.constant 0 : index
    %c0_2 = arith.constant 0 : index
    %1 = vector.load %arg2[%c0_1, %c0_2] : memref<32x128xf32, #tpu.memory_space<vmem>>, vector<32x128xf32>
    %cst = arith.constant dense<0.000000e+00> : vector<8x128xf32>
    %2 = tpu.matmul %0, %1, %cst {dimension_numbers = #tpu.dot_dimension_numbers<[1], [0], [0], [1], [0, 0, 1, 1], [], []>} : vector<8x32xf32>, vector<32x128xf32>, vector<8x128xf32> -> vector<8x128xf32>
    %c0_3 = arith.constant 0 : index
    %c0_4 = arith.constant 0 : index
    %3 = vector.load %arg3[%c0_3, %c0_4] : memref<1x128xf32, #tpu.memory_space<vmem>>, vector<1x128xf32>
    %4 = vector.broadcast %3 : vector<1x128xf32> to vector<8x128xf32>
    %5 = arith.addf %2, %4 : vector<8x128xf32>
    %cst_5 = arith.constant 0.000000e+00 : f32
    %6 = vector.broadcast %cst_5 : f32 to vector<8x128xf32>
    %7 = arith.maximumf %5, %6 : vector<8x128xf32>
    %c0_6 = arith.constant 0 : index
    %c0_7 = arith.constant 0 : index
    %8 = vector.load %arg4[%c0_6, %c0_7] : memref<128x16xf32, #tpu.memory_space<vmem>>, vector<128x16xf32>
    %cst_8 = arith.constant dense<0.000000e+00> : vector<8x16xf32>
    %9 = tpu.matmul %7, %8, %cst_8 {dimension_numbers = #tpu.dot_dimension_numbers<[1], [0], [0], [1], [0, 0, 1, 1], [], []>} : vector<8x128xf32>, vector<128x16xf32>, vector<8x16xf32> -> vector<8x16xf32>
    %c0_9 = arith.constant 0 : index
    %c0_10 = arith.constant 0 : index
    %10 = vector.load %arg5[%c0_9, %c0_10] : memref<1x16xf32, #tpu.memory_space<vmem>>, vector<1x16xf32>
    %11 = vector.broadcast %10 : vector<1x16xf32> to vector<8x16xf32>
    %12 = arith.addf %9, %11 : vector<8x16xf32>
    %cst_11 = arith.constant 0.000000e+00 : f32
    %13 = vector.broadcast %cst_11 : f32 to vector<8x16xf32>
    %14 = arith.maximumf %12, %13 : vector<8x16xf32>
    %c0_12 = arith.constant 0 : index
    %c0_13 = arith.constant 0 : index
    %15 = vector.load %arg6[%c0_12, %c0_13] : memref<8x16xf32, #tpu.memory_space<vmem>>, vector<8x16xf32>
    tpu.vector_store %arg6[%c0_12, %c0_13], %14 {strides = array<i32>} : memref<8x16xf32, #tpu.memory_space<vmem>>, vector<8x16xf32>,
    return
  }
  func.func @transform_0(%arg0: i32) -> (i32, i32) {
    %c0_i32 = arith.constant 0 : i32
    %c0_i32_0 = arith.constant 0 : i32
    return %arg0, %c0_i32 : i32, i32
  }
  func.func @transform_1(%arg0: i32) -> (i32, i32) {
    %c0_i32 = arith.constant 0 : i32
    %c0_i32_0 = arith.constant 0 : i32
    %c0_i32_1 = arith.constant 0 : i32
    return %c0_i32, %c0_i32_0 : i32, i32
  }
  func.func @transform_2(%arg0: i32) -> (i32, i32) {
    %c0_i32 = arith.constant 0 : i32
    %c0_i32_0 = arith.constant 0 : i32
    %c0_i32_1 = arith.constant 0 : i32
    return %c0_i32, %c0_i32_0 : i32, i32
  }
  func.func @transform_3(%arg0: i32) -> (i32, i32) {
    %c0_i32 = arith.constant 0 : i32
    %c0_i32_0 = arith.constant 0 : i32
    %c0_i32_1 = arith.constant 0 : i32
    return %c0_i32, %c0_i32_0 : i32, i32
  }
  func.func @transform_4(%arg0: i32) -> (i32, i32) {
    %c0_i32 = arith.constant 0 : i32
    %c0_i32_0 = arith.constant 0 : i32
    %c0_i32_1 = arith.constant 0 : i32
    return %c0_i32, %c0_i32_0 : i32, i32
  }
  func.func @transform_5(%arg0: i32) -> (i32, i32) {
    %c0_i32 = arith.constant 0 : i32
    %c0_i32_0 = arith.constant 0 : i32
    return %arg0, %c0_i32 : i32, i32
  }
}

</mosaic_0001>

<bundles_post_ra>
// kernel: tpu_custom_call.1
= control target key start
LH: loop header
LB: loop body
LE: loop exit
PB: predicated region body
PF: predicated region fallthrough
CT: control target
= control target key end

     0   :  { %v314_v1 = vmov 0.0   ;;  %vm315_vm0 = vmmov 0   ;;  %vm33_vm1 = vcmask 261120   ;;  %s443_s0 = inlined_call_operand.vmem [shape: f32[8,32], index: 0, kind: input, shape index: {}]   ;;  %s444_s1 = inlined_call_operand.vmem [shape: f32[32,128], index: 1, kind: input, shape index: {}]   ;;  %s445_s2 = inlined_call_operand.vmem [shape: f32[1,128], index: 2, kind: input, shape index: {}]   ;;  %s446_s3 = inlined_call_operand.vmem [shape: f32[128,16], index: 3, kind: input, shape index: {}]   ;;  %s447_s4 = inlined_call_operand.vmem [shape: f32[1,16], index: 4, kind: input, shape index: {}]   ;;  %s448_s5 = inlined_call_operand.hbm [shape: f32[8,16], index: 5, kind: output, shape index: {}]  }
   0x1   :  { %v25_v0 = vld [vmem:[%s444_s1 + $0x18] sm:$0xff]  ;;  %243 = vmatprep.subr.mxu0 %v314_v1  ;;  %v24_v2 = vld [vmem:[%s444_s1 + $0x10] sm:$0xff]  ;;  %251 = vmatprep.mubr.msk.f32.mxu0 %vm315_vm0, %v314_v1  ;;  %v23_v5 = vld [vmem:[%s444_s1 + $0x8] sm:$0xff] }
   0x2   :  { %v123_v3 = vld [vmem:[%s446_s3 + $0x78] sm:$0xff]  ;;  %244 = vmatpush3.msra.mxu0 %v25_v0  ;;  %254 = vmatprep.subr.mxu1 %v314_v1  ;;  %v122_v4 = vld [vmem:[%s446_s3 + $0x70] sm:$0xff]  ;;  %v121_v6 = vld [vmem:[%s446_s3 + $0x68] sm:$0xff] }
   0x3   :  { %245 = vmatprep.subr.mxu0 %v314_v1  ;;  %255 = vmatpush3.msra.mxu1 %v123_v3  ;;  %v22_v7 = vld [vmem:[%s444_s1] sm:$0xff] }
   0x4   :  { %246 = vmatpush3.msra.mxu0 %v24_v2  ;;  %256 = vmatprep.subr.mxu1 %v314_v1  ;;  %v21_v8 = vld [vmem:[%s443_s0] sm:$0xff] }
   0x5   :  { %247 = vmatprep.subr.mxu0 %v314_v1  ;;  %257 = vmatpush3.msra.mxu1 %v122_v4  ;;  %v120_v9 = vld [vmem:[%s446_s3 + $0x60] sm:$0xff] }
   0x6   :  { %248 = vmatpush3.msra.mxu0 %v23_v5  ;;  %258 = vmatprep.subr.mxu1 %v314_v1 }
   0x7   :  { %10 = vsyncpa [#allocation3], 0  ;;  %249 = vmatprep.subr.mxu0 %v314_v1  ;;  %259 = vmatpush3.msra.mxu1 %v121_v6  ;;  %v119_v10 = vld [vmem:[%s446_s3 + $0x58] sm:$0xff]  ;;  %v118_v11 = vld [vmem:[%s446_s3 + $0x50] sm:$0xff]  ;;  %s316_s11 = smov [#allocation2]   ;;  %vm202_vm2 = vcmask 130048  }
   0x8   :  { %250 = vmatpush3.msra.mxu0 %v22_v7  ;;  %260 = vmatprep.subr.mxu1 %v314_v1  ;;  %v117_v12 = vld [vmem:[%s446_s3 + $0x48] sm:$0xff]  ;;  %v116_v13 = vld [vmem:[%s446_s3 + $0x40] sm:$0xff]  ;;  %v115_v14 = vld [vmem:[%s446_s3 + $0x38] sm:$0xff]  ;;  %s210_s0 = sshll.u32 %s316_s11, 4  ;;  %s211_s0 = int_to_ptr.vmem [resolvable:$true] %s210_s0 }
   0x9   :  { %252 = vmatmul.mubr.msk.f32.vlgmr.msra.gmra.mxu0 %vm33_vm1, %v21_v8  ;;  %261 = vmatpush3.msra.mxu1 %v120_v9  ;;  %v114_v15 = vld [vmem:[%s446_s3 + $0x30] sm:$0xff]  ;;  %v113_v16 = vld [vmem:[%s446_s3 + $0x28] sm:$0xff]  ;;  %v112_v17 = vld [vmem:[%s446_s3 + $0x20] sm:$0xff]  ;;  %p297_p1 = scmp.lt.s32.totalorder %s211_s0, %s211_s0 }
   0xa   :  { %262 = vmatprep.subr.mxu1 %v314_v1  ;;  %286 = vmatprep.mubr.msk.f32.mxu1 %vm315_vm0, %v314_v1  ;;  %v111_v18 = vld [vmem:[%s446_s3 + $0x18] sm:$0xff]  ;;  %v110_v19 = vld [vmem:[%s446_s3 + $0x10] sm:$0xff]  ;;  %v109_v20 = vld [vmem:[%s446_s3 + $0x8] sm:$0xff] }
   0xb   :  { %263 = vmatpush3.msra.mxu1 %v119_v10  ;;  %v108_v21 = vld [vmem:[%s446_s3] sm:$0xff]  ;;  %s292_s3 = scalar_lea.vmem %s211_s0, 128 }
   0xc   :  { %264 = vmatprep.subr.mxu1 %v314_v1  ;;  %v218_v22 = vld [vmem:[%s445_s2] ss:$0 sm:$0xff]  ;;  %p293_p0 = scmp.ne.s32.totalorder %s211_s0, %s292_s3  ;;  %p298_p2 = scmp.lt.s32.totalorder %s292_s3, %s292_s3 }
   0xd   :  { %265 = vmatpush3.msra.mxu1 %v118_v11  ;;  %v220_v27 = vld [vmem:[%s447_s4] ss:$0 sm:$0xff] }
   0xe   :  { %266 = vmatprep.subr.mxu1 %v314_v1  ;;  %p299_p3 = por %p298_p2, %p297_p1 }
   0xf   :  { %267 = vmatpush3.msra.mxu1 %v117_v12 }
  0x10   :  { %268 = vmatprep.subr.mxu1 %v314_v1  ;;  %p300_p4 = pnand %p299_p3, %p293_p0 }
  0x11   :  { %269 = vmatpush3.msra.mxu1 %v116_v13 }
  0x12   :  { %270 = vmatprep.subr.mxu1 %v314_v1 }
  0x13   :  { %271 = vmatpush3.msra.mxu1 %v115_v14 }
  0x14   :  { %272 = vmatprep.subr.mxu1 %v314_v1 }
  0x15   :  { %273 = vmatpush3.msra.mxu1 %v114_v15 }
  0x16   :  { %274 = vmatprep.subr.mxu1 %v314_v1 }
  0x17   :  { %275 = vmatpush3.msra.mxu1 %v113_v16 }
  0x18   :  { %276 = vmatprep.subr.mxu1 %v314_v1 }
  0x19   :  { %277 = vmatpush3.msra.mxu1 %v112_v17 }
  0x1a   :  { %278 = vmatprep.subr.mxu1 %v314_v1 }
  0x1b   :  { %279 = vmatpush3.msra.mxu1 %v111_v18 }
  0x1c   :  { %280 = vmatprep.subr.mxu1 %v314_v1 }
  0x1d   :  { %281 = vmatpush3.msra.mxu1 %v110_v19 }
  0x1e   :  { %282 = vmatprep.subr.mxu1 %v314_v1 }
  0x1f   :  { %283 = vmatpush3.msra.mxu1 %v109_v20 }
  0x20   :  { %284 = vmatprep.subr.mxu1 %v314_v1 }
  0x21   :  { %285 = vmatpush3.msra.mxu1 %v108_v21 }
  0xc9   :  { %v103_v23 = vpop.f32.mrf.mxu0 }
  0xca   :  { %v104_v24 = vadd.f32 %v218_v22, %v103_v23 }
  0xcb   :  { %v253_v25 = vpop.f32.mrf.mxu0 }
  0xcc   :  { %v107_v26 = vmax.f32 %v104_v24, 0.0 }
  0xce   :  { %287 = vmatmul.mubr.f32.vlgmr.msra.gmra.mxu1 %v107_v26 }
 0x18e   :  { %v197_v28 = vpop.f32.mrf.mxu1 }
 0x18f   :  { %v198_v29 = vadd.f32 %v220_v27, %v197_v28 }
 0x190   :  { %v288_v30 = vpop.f32.mrf.mxu1 }
 0x191   :  { %v201_v31 = vmax.f32 %v198_v29, 0.0 }
 0x193   :  { %203 = vst.msk [vmem:[#allocation2] sm:$0xff] %vm202_vm2, %v201_v31 }
 0x194   :  { %303 = shalt.err (!%p300_p4)
}
 0x195   :  { %213 = dma.vmem_to_hbm [thread:$0]  %s211_s0, 128, %s448_s5, [#allocation3]  }
 0x196   :  { %312 = dma.done.wait [#allocation3], 128  }
 0x197   :  { %313 = vsyncadd [#allocation3], 4294967168 }
 0x198   :  { %217 = vsyncpa [#allocation3], 1 }

</bundles_post_ra>
